<compile_context>
chip_gen: v6e
topology: v6e:2x2x1
jax: 0.10.0
libtpu: 0.0.40
codegen_flags: <defaults>
</compile_context>

<pallas_src>
import functools

import jax
import jax.numpy as jnp
import numpy as np
from jax import lax
from jax.experimental import pallas as pl
from jax.experimental.pallas import tpu as pltpu


# ----------------------------------------------------------------------------
# Pallas kernel
# ----------------------------------------------------------------------------
def _spatial_gradient_kernel(x_ref, o_ref, *, order, direction):
    """x_ref/o_ref: (Pb, H, W) blocks — W in lanes, H in sublanes."""
    x = x_ref[...]                                   # native dtype
    _, H, W = x.shape
    dt = x.dtype
    zero = jnp.zeros((), dt)

    # Hoisted edge masks (lane / sublane iotas, broadcast inside jnp.where).
    w_iota = lax.broadcasted_iota(jnp.int32, (1, 1, W), 2)
    h_iota = lax.broadcasted_iota(jnp.int32, (1, H, 1), 1)

    def nbr(a, axis, d):
        """out[..., i, ...] = a[..., i + d, ...] along `axis`, zero past the edge."""
        size = a.shape[axis]
        r = pltpu.roll(a, shift=(-d) % size, axis=axis)   # XLU rotate
        iota = w_iota if axis == 2 else h_iota
        edge = (size - 1) if d > 0 else 0
        return jnp.where(iota == edge, zero, r)

    need_x = direction <= 0
    need_y = direction >= 0
    gx = gy = None

    if order == 1:
        # Sobel is separable: [1,2,1] smoothing on one axis, [-1,0,1] diff on
        # the other.  +-2 via (a + a).
        if need_x:
            s = nbr(x, 1, -1) + (x + x) + nbr(x, 1, +1)    # smooth along H
            gx = nbr(s, 2, +1) - nbr(s, 2, -1)             # diff along W
        if need_y:
            t = nbr(x, 2, -1) + (x + x) + nbr(x, 2, +1)    # smooth along W
            gy = nbr(t, 1, +1) - nbr(t, 1, -1)             # diff along H
    else:  # order == 2: 1-D Laplacian taps [1, -2, 1]
        c2 = x + x
        if need_x:
            gx = nbr(x, 2, -1) + nbr(x, 2, +1) - c2
        if need_y:
            gy = nbr(x, 1, -1) + nbr(x, 1, +1) - c2

    if direction < 0:
        out = jnp.abs(gx)
    elif direction > 0:
        out = jnp.abs(gy)
    else:
        gxf = gx.astype(jnp.float32)
        gyf = gy.astype(jnp.float32)
        out = jnp.sqrt(gxf * gxf + gyf * gyf)    # sqrt >= 0: abs would be redundant

    o_ref[...] = out.astype(o_ref.dtype)


# ----------------------------------------------------------------------------
# Wrapper
# ----------------------------------------------------------------------------
def _choose_plane_block(P, plane_bytes):
    """Planes per grid step (leading block dim)."""
    target = 1 << 20                                  # ~1 MiB input block
    pb = max(1, min(P, target // max(plane_bytes, 1)))
    # Keep >= ~4 grid steps when possible: feeds both v7x TensorCores and keeps
    # the double-buffered DMA pipeline busy.
    if P > 1:
        pb = min(pb, max(1, pl.cdiv(P, 4)))
    # Prefer a nearby exact divisor of P (avoids a ragged tail block).
    for d in range(pb, max(pb - 8, 0), -1):
        if P % d == 0:
            return d
    return pb


def spatial_gradient(x, *, order=1, direction=0):
    """x: (N, C, H, W).  Returns same shape; matches the PyTorch module."""
    if order not in (1, 2):
        raise ValueError("order must be 1 or 2")
    N, C, H, W = x.shape
    P = N * C
    xp = x.reshape(P, H, W)                           # free view — NCHW is contiguous

    itemsize = jnp.dtype(x.dtype).itemsize
    Pb = _choose_plane_block(P, H * W * itemsize)
    grid = (pl.cdiv(P, Pb),)

    # TODO(synk): add an H-tiled path (overlapping blocks with a 1-row halo via
    # manual DMA) for very large single planes that do not fit one VMEM block.

    kernel = functools.partial(
        _spatial_gradient_kernel, order=order, direction=direction)

    elems = P * H * W
    out = pl.pallas_call(
        kernel,
        out_shape=jax.ShapeDtypeStruct((P, H, W), x.dtype),
        grid_spec=pltpu.PrefetchScalarGridSpec(
            num_scalar_prefetch=0,
            grid=grid,
            in_specs=[pl.BlockSpec((Pb, H, W), lambda i: (i, 0, 0))],
            out_specs=pl.BlockSpec((Pb, H, W), lambda i: (i, 0, 0)),
        ),
        compiler_params=pltpu.CompilerParams(
            dimension_semantics=("parallel",),
            vmem_limit_bytes=32 * 1024 * 1024),
        cost_estimate=pl.CostEstimate(
            flops=(14 if direction == 0 else 7) * elems,
            transcendentals=(elems if direction == 0 else 0),
            bytes_accessed=2 * elems * itemsize),
    )(xp)

    return out.reshape(N, C, H, W)


# ----------------------------------------------------------------------------
# Pure-JAX reference (reproduces the PyTorch module with the full block-
# diagonal (C, C, 3, 3) conv weights, padding=1, no bias).
# ----------------------------------------------------------------------------
def _stencil_weights(order):
    if order == 1:
        kx = np.array([[-1.0, 0.0, 1.0],
                       [-2.0, 0.0, 2.0],
                       [-1.0, 0.0, 1.0]], dtype=np.float32)
        ky = np.array([[-1.0, -2.0, -1.0],
                       [ 0.0,  0.0,  0.0],
                       [ 1.0,  2.0,  1.0]], dtype=np.float32)
    else:
        kx = np.array([[0.0,  0.0, 0.0],
                       [1.0, -2.0, 1.0],
                       [0.0,  0.0, 0.0]], dtype=np.float32)
        ky = np.array([[0.0,  1.0, 0.0],
                       [0.0, -2.0, 0.0],
                       [0.0,  1.0, 0.0]], dtype=np.float32)
    return kx, ky


def _reference(x, *, order=1, direction=0):
    N, C, H, W = x.shape
    kx, ky = _stencil_weights(order)
    wx = np.zeros((C, C, 3, 3), dtype=np.float32)
    wy = np.zeros((C, C, 3, 3), dtype=np.float32)
    for c in range(C):
        wx[c, c] = kx
        wy[c, c] = ky

    def conv(inp, w):
        return lax.conv_general_dilated(
            inp, jnp.asarray(w), window_strides=(1, 1),
            padding=((1, 1), (1, 1)),
            dimension_numbers=("NCHW", "OIHW", "NCHW"),
        )

    if direction < 0:
        out = conv(x, wx)
    elif direction > 0:
        out = conv(x, wy)
    else:
        gx = conv(x, wx)
        gy = conv(x, wy)
        out = jnp.sqrt(gx * gx + gy * gy)
    return jnp.abs(out)


if __name__ == "__main__":
    key = jax.random.PRNGKey(0)
    N, C, H, W = 2, 4, 16, 16
    x = jax.random.normal(key, (N, C, H, W), dtype=jnp.float32)

    ok = True
    for order in (1, 2):
        for direction in (-1, 0, 1):
            out = spatial_gradient(x, order=order, direction=direction)
            out = jax.block_until_ready(out)
            ref = jax.block_until_ready(
                _reference(x, order=order, direction=direction))
            if not np.allclose(np.asarray(out), np.asarray(ref),
                               atol=1e-5, rtol=1e-5):
                ok = False
                print(f"MISMATCH order={order} direction={direction}")

    if ok:
        print("KERNEL_OK")
</pallas_src>

<mosaic_0001>
module attributes {stable_mosaic.version = 11 : i64} {
  func.func @_spatial_gradient_kernel(%arg0: i32, %arg1: memref<2x16x16xf32, #tpu.memory_space<vmem>>, %arg2: memref<2x16x16xf32, #tpu.memory_space<vmem>>) attributes {dimension_semantics = [#tpu.dimension_semantics<parallel>], iteration_bounds = array<i64: 4>, scalar_prefetch = 0 : i64, scratch_operands = 0 : i64, tpu.core_type = #tpu.core_type<tc>, window_params = [{transform_indices = @transform_0, window_bounds = array<i64: 2, 16, 16>}, {transform_indices = @transform_1, window_bounds = array<i64: 2, 16, 16>}]} {
    %c0 = arith.constant 0 : index
    %c0_0 = arith.constant 0 : index
    %c0_1 = arith.constant 0 : index
    %0 = vector.load %arg1[%c0, %c0_0, %c0_1] : memref<2x16x16xf32, #tpu.memory_space<vmem>>, vector<2x16x16xf32>
    %1 = tpu.iota {dimensions = array<i32: 2>} : vector<1x1x16xi32>
    %2 = tpu.iota {dimensions = array<i32: 1>} : vector<1x16x1xi32>
    %c1_i32 = arith.constant 1 : i32
    %3 = tpu.dynamic_rotate %0 by %c1_i32 dim 1 : vector<2x16x16xf32>, i32 -> vector<2x16x16xf32>
    %c0_i32 = arith.constant 0 : i32
    %4 = vector.broadcast %c0_i32 : i32 to vector<1x16x1xi32>
    %5 = arith.cmpi eq, %2, %4 : vector<1x16x1xi32>
    %cst = arith.constant 0.000000e+00 : f32
    %6 = vector.shape_cast %5 : vector<1x16x1xi1> to vector<1x16x1xi1>
    %7 = vector.broadcast %6 : vector<1x16x1xi1> to vector<2x16x16xi1>
    %8 = vector.broadcast %cst : f32 to vector<2x16x16xf32>
    %9 = arith.select %7, %8, %3 : vector<2x16x16xi1>, vector<2x16x16xf32>
    %10 = arith.addf %0, %0 : vector<2x16x16xf32>
    %11 = arith.addf %9, %10 : vector<2x16x16xf32>
    %c15_i32 = arith.constant 15 : i32
    %12 = tpu.dynamic_rotate %0 by %c15_i32 dim 1 : vector<2x16x16xf32>, i32 -> vector<2x16x16xf32>
    %c15_i32_2 = arith.constant 15 : i32
    %13 = vector.broadcast %c15_i32_2 : i32 to vector<1x16x1xi32>
    %14 = arith.cmpi eq, %2, %13 : vector<1x16x1xi32>
    %cst_3 = arith.constant 0.000000e+00 : f32
    %15 = vector.shape_cast %14 : vector<1x16x1xi1> to vector<1x16x1xi1>
    %16 = vector.broadcast %15 : vector<1x16x1xi1> to vector<2x16x16xi1>
    %17 = vector.broadcast %cst_3 : f32 to vector<2x16x16xf32>
    %18 = arith.select %16, %17, %12 : vector<2x16x16xi1>, vector<2x16x16xf32>
    %19 = arith.addf %11, %18 : vector<2x16x16xf32>
    %c15_i32_4 = arith.constant 15 : i32
    %20 = tpu.dynamic_rotate %19 by %c15_i32_4 dim 2 : vector<2x16x16xf32>, i32 -> vector<2x16x16xf32>
    %c15_i32_5 = arith.constant 15 : i32
    %21 = vector.broadcast %c15_i32_5 : i32 to vector<1x1x16xi32>
    %22 = arith.cmpi eq, %1, %21 : vector<1x1x16xi32>
    %cst_6 = arith.constant 0.000000e+00 : f32
    %23 = vector.shape_cast %22 : vector<1x1x16xi1> to vector<1x1x16xi1>
    %24 = vector.broadcast %23 : vector<1x1x16xi1> to vector<2x16x16xi1>
    %25 = vector.broadcast %cst_6 : f32 to vector<2x16x16xf32>
    %26 = arith.select %24, %25, %20 : vector<2x16x16xi1>, vector<2x16x16xf32>
    %c1_i32_7 = arith.constant 1 : i32
    %27 = tpu.dynamic_rotate %19 by %c1_i32_7 dim 2 : vector<2x16x16xf32>, i32 -> vector<2x16x16xf32>
    %c0_i32_8 = arith.constant 0 : i32
    %28 = vector.broadcast %c0_i32_8 : i32 to vector<1x1x16xi32>
    %29 = arith.cmpi eq, %1, %28 : vector<1x1x16xi32>
    %cst_9 = arith.constant 0.000000e+00 : f32
    %30 = vector.shape_cast %29 : vector<1x1x16xi1> to vector<1x1x16xi1>
    %31 = vector.broadcast %30 : vector<1x1x16xi1> to vector<2x16x16xi1>
    %32 = vector.broadcast %cst_9 : f32 to vector<2x16x16xf32>
    %33 = arith.select %31, %32, %27 : vector<2x16x16xi1>, vector<2x16x16xf32>
    %34 = arith.subf %26, %33 : vector<2x16x16xf32>
    %35 = math.absf %34 : vector<2x16x16xf32>
    %c0_10 = arith.constant 0 : index
    %c0_11 = arith.constant 0 : index
    %c0_12 = arith.constant 0 : index
    %36 = vector.load %arg2[%c0_10, %c0_11, %c0_12] : memref<2x16x16xf32, #tpu.memory_space<vmem>>, vector<2x16x16xf32>
    tpu.vector_store %arg2[%c0_10, %c0_11, %c0_12], %35 {strides = array<i32>} : memref<2x16x16xf32, #tpu.memory_space<vmem>>, vector<2x16x16xf32>,
    return
  }
  func.func @transform_0(%arg0: i32) -> (i32, i32, i32) {
    %c0_i32 = arith.constant 0 : i32
    %c0_i32_0 = arith.constant 0 : i32
    %c0_i32_1 = arith.constant 0 : i32
    return %arg0, %c0_i32, %c0_i32_0 : i32, i32, i32
  }
  func.func @transform_1(%arg0: i32) -> (i32, i32, i32) {
    %c0_i32 = arith.constant 0 : i32
    %c0_i32_0 = arith.constant 0 : i32
    %c0_i32_1 = arith.constant 0 : i32
    return %arg0, %c0_i32, %c0_i32_0 : i32, i32, i32
  }
}

</mosaic_0001>

<bundles_post_ra>
// kernel: tpu_custom_call.1
= control target key start
LH: loop header
LB: loop body
LE: loop exit
PB: predicated region body
PF: predicated region fallthrough
CT: control target
= control target key end

     0   :  { %6 = vsyncpa [#allocation3], 0  ;;  %s741_s0 = inlined_call_operand.hbm [shape: f32[8,16,16], index: 0, kind: input, shape index: {}]   ;;  %s742_s1 = inlined_call_operand.hbm [shape: f32[8,16,16], index: 1, kind: output, shape index: {}]  }
   0x1   :  { %8 = vsyncpa [#allocation3 + $0x1], 0 }
   0x2   :  { %9 = vsyncpa [#allocation4], 0 }
   0x3   :  { %11 = vsyncpa [#allocation4 + $0x1], 0  ;;  %s551_s6 = smov 0   ;;  %s553_s7 = smov 0  }
   0x4   :  { %s555_s8 = smov 0   ;;  %s557_s9 = smov 0  }
   0x5 LB: > { %s572_s10 = sadd.s32 4294967295, %s530_s9   ;;  %s365_s11 = sadd.s32 4294967294, %s530_s9   ;;  %s530_s9 = sphi %s557_s9, %s756_s9   ;;  %s526_s8 = sphi %s555_s8, %s755_s8   ;;  %s522_s7 = sphi %s553_s7, %s754_s7   ;;  %s518_s6 = sphi %s551_s6, %s753_s6  }
   0x6   : > { %s576_s12 = sadd.s32 1, %s530_s9   ;;  %s24_s13 = sadd.s32 1, %s526_s8 }
   0x7   : > { %s21_s14 = ssub.s32 %s530_s9, %s576_s12  ;;  %p31_p0 = scmp.ne.s32.totalorder %s526_s8, %s522_s7 }
   0x8   : > { %p22_p1 = scmp.eq.s32.totalorder %s21_s14, 0  ;;  %p32_p2 = scmp.eq.s32.totalorder %s530_s9, 0 }
   0x9   : > { %p37_p3 = scmp.ne.s32.totalorder %s522_s7, %s518_s6  ;;  %p38_p4 = scmp.eq.s32.totalorder %s572_s10, 0 }
   0xa   : > { %s588_s15 = scalar_select %p22_p1, %s526_s8, %s24_s13  }
   0xb   : > { %p590_p5 = por %p32_p2, %p31_p0  ;;  %p594_p6 = por %p38_p4, %p37_p3 }
   0xc   : > { %p61_p7 = scmp.eq.s32.totalorder %s572_s10, 3  ;;  %p67_p8 = scmp.eq.s32.totalorder %s365_s11, 3 }
   0xd   : > { %s746_s17 = scalar_select %p594_p6, 1, 0 }
   0xe   : > { %p397_p9 = scmp.lt.s32.totalorder %s530_s9, 4  ;;  %p600_p10 = por %p61_p7, %p31_p0 }
   0xf   : > { %p604_p11 = por %p67_p8, %p37_p3  ;;  %s87_s20 = sand.u32 1, %s526_s8  }
  0x10   : > { %s747_s18 = scalar_select %p600_p10, 1, 0 }
  0x11   : > { %s748_s19 = scalar_select %p604_p11, 1, 0 }
  0x12   : > { %s382_s21 = sshll.u32 %s530_s9, 9  ;;  %s368_s22 = sshll.u32 %s87_s20, 5 }
  0x13   : > { %s613_s25 = scalar_lea.hbm %s741_s0, %s382_s21  ;;  %s91_s26 = scalar_lea.vmem [#allocation2], %s368_s22 }
  0x14   : > { %s99_s27 = sshll.u32 %s91_s26, 4  ;;  %p617_p12 = pnand %p397_p9, %p590_p5  ;;  %s621_s27 = int_to_ptr.vmem [resolvable:$true] %s99_s27 }
  0x15   : > { %s623_s29 = scalar_lea.sflag [#allocation3], %s87_s20  ;;  %s438_s30 = scalar_lea.hbm %s613_s25, 512 }
  0x16   : > { %p439_p13 = scmp.ne.s32.totalorder %s613_s25, %s438_s30  ;;  %p440_p0 = pneg %p617_p12 }
  0x17   : > { %s443_s4 = scalar_lea.hbm %s741_s0, 2048  ;;  %p444_p3 = scmp.lt.s32.totalorder %s613_s25, %s741_s0 }
  0x18   : > { %p441_p1 = pnand %p440_p0, %p439_p13  ;;  %p445_p4 = scmp.lt.s32.totalorder %s443_s4, %s438_s30 }
  0x1a   : > { %p442_p2 = pneg %p441_p1  ;;  %p446_p5 = por %p445_p4, %p444_p3 }
  0x1c   : > { %p447_p7 = pnand %p446_p5, %p442_p2 }
  0x1e   : > { %450 = shalt.err (!%p447_p7)
}
  0x1f   : > { %s451_s13 = scalar_lea.vmem %s621_s27, 512  ;;  %s532_s14 = smov [#allocation2]  }
  0x20   : > { %p452_p8 = scmp.ne.s32.totalorder %s621_s27, %s451_s13  ;;  %s456_s16 = sshll.u32 %s532_s14, 4  ;;  %s457_s16 = int_to_ptr.vmem [resolvable:$false] %s456_s16 }
  0x21   : > { %s458_s20 = scalar_lea.vmem %s457_s16, 1024  ;;  %p459_p1 = scmp.lt.s32.totalorder %s621_s27, %s457_s16 }
  0x22   : > { %p454_p9 = pnand %p452_p8, %p440_p0  ;;  %p460_p11 = scmp.lt.s32.totalorder %s458_s20, %s451_s13 }
  0x24   : > { %p455_p13 = pneg %p454_p9  ;;  %p461_p10 = por %p460_p11, %p459_p1 }
  0x26   : > { %p462_p6 = pnand %p461_p10, %p455_p13 }
  0x28   : > { %465 = shalt.err (!%p462_p6)
}
  0x29   : > { %s533_s21 = smov 128   ;;  %s534_s22 = smov 8  }
  0x2a   : > { %392 = dma.hbm_to_vmem [thread:$0]  (!%p617_p12), %s613_s25, 512, %s621_s27, %s623_s29, %s533_s21, %s533_s21, %s534_s22  }
  0x2b   : > { %p372_p0 = scmp.ge.s32.totalorder %s530_s9, 1  ;;  %p107_p2 = scmp.lt.s32.totalorder %s530_s9, 5 }
  0x2d   : > { %p108_p3 = pnand %p372_p0, %p107_p2 }
  0x2e   : > { %s647_s23 = sand.u32 (!%p108_p3), 1, %s522_s7   ;;  %p750_p6 = scmp.ne.s32.totalorder (!%p108_p3), %s746_s17, 0 }
  0x2f   : > { %111 = sbr.rel (%p108_p3) target bundleno = 446 (0x1be), region = 24  ;;  %s373_s24 = sshll.u32 (!%p108_p3), %s647_s23, 5 }
  0x30   : > { %s114_s26 = scalar_lea.sflag (!%p108_p3), [#allocation3], %s647_s23  ;;  %s117_s30 = scalar_lea.vmem (!%p108_p3), [#allocation2], %s373_s24 }
  0x34   : > { %509 = dma.done.wait (%p750_p6), %s114_s26, 512  }
  0x35   : > { %511 = vsyncadd (%p750_p6), %s114_s26, 4294966784  ;;  %v142_v0 = vlaneseq  ;;  %v138_v3 = vld [vmem:[%s117_s30] sm:$0xff]  ;;  %v139_v4 = vld [vmem:[%s117_s30 + $0x8] sm:$0xff]  ;;  %s535_s17 = smov 16   ;;  %vm197_vm4 = vcmask 1047680   ;;  %s536_s25 = smov 127  }
  0x36   : > { %v140_v5 = vld [vmem:[%s117_s30 + $0x10] sm:$0xff]  ;;  %v147_v6 = vrot.slane %v138_v3, 7  ;;  %v149_v7 = vrot.slane %v139_v4, 7  ;;  %v166_v8 = vadd.f32 %v138_v3, %v138_v3  ;;  %v174_v9 = vrot.slane %v138_v3, 1  ;;  %v141_v10 = vld [vmem:[%s117_s30 + $0x18] sm:$0xff]  ;;  %s537_s27 = smov 113  }
  0x37   : > { %v145_v1 = vshrl.u32 %v142_v0, 7  ;;  %v176_v11 = vrot.slane %v139_v4, 1  ;;  %v148_v12 = vrot.slane %v140_v5, 7  ;;  %v150_v13 = vrot.slane %v141_v10, 7  ;;  %s135_s28 = scalar_lea.vmem [#allocation5], %s373_s24  ;;  %s384_s2 = sshll.u32 %s572_s10, 9 }
  0x38   : > { %v168_v14 = vadd.f32 %v140_v5, %v140_v5  ;;  %v175_v16 = vrot.slane %v140_v5, 1  ;;  %v177_v17 = vrot.slane %v141_v10, 1  ;;  %v167_v22 = vadd.f32 %v139_v4, %v139_v4  ;;  %s292_s29 = sshll.u32 %s135_s28, 4  ;;  %s698_s5 = scalar_lea.hbm %s742_s1, %s384_s2  ;;  %s691_s29 = int_to_ptr.vmem [resolvable:$true] %s292_s29 }
  0x39   : > { %v146_v2 = vadd.s32 8, %v145_v1  ;;  %vm151_vm0 = vcmp.lt.s32.totalorder %v145_v1, 1  ;;  %vm156_vm1 = vcmp.eq.s32.totalorder %v145_v1, 0  ;;  %vm178_vm2 = vcmp.lt.s32.totalorder %v145_v1, 7  ;;  %s278_s10 = scalar_lea.sflag [#allocation4], %s647_s23  ;;  %s466_s11 = scalar_lea.vmem %s691_s29, 512 }
  0x3a   : > { %v154_v15 = vsel %vm151_vm0, %v149_v7, %v147_v6  ;;  %v152_v18 = vsel %vm151_vm0, %v147_v6, %v149_v7  ;;  %v179_v20 = vsel %vm178_vm2, %v174_v9, %v176_v11  ;;  %v155_v21 = vsel %vm151_vm0, %v150_v13, %v148_v12  ;;  %p467_p10 = scmp.ne.s32.totalorder %s691_s29, %s466_s11  ;;  %p751_p11 = scmp.ne.s32.totalorder %s747_s18, 0 }
  0x3b   : > { %vm184_vm3 = vcmp.eq.s32.totalorder %v146_v2, 15  ;;  %v162_v19 = vsel %vm156_vm1, 0.0, %v154_v15  ;;  %v164_v24 = vsel %vm156_vm1, 0.0, %v155_v21  ;;  %v180_v25 = vsel %vm178_vm2, %v175_v16, %v177_v17  ;;  %s538_s13 = smov [#allocation5]  }
  0x3c   : > { %v170_v23 = vadd.f32 %v166_v8, %v162_v19  ;;  %v181_v26 = vsel %vm178_vm2, %v176_v11, %v174_v9  ;;  %v172_v27 = vadd.f32 %v168_v14, %v164_v24  ;;  %v171_v28 = vadd.f32 %v167_v22, %v152_v18  ;;  %p468_p12 = pnand %p467_p10, %p751_p11  ;;  %s470_s14 = sshll.u32 %s538_s13, 4  ;;  %s471_s14 = int_to_ptr.vmem [resolvable:$false] %s470_s14 }
  0x3d   : > { %v190_v29 = vsel %vm184_vm3, 0.0, %v181_v26  ;;  %v153_v30 = vsel %vm151_vm0, %v148_v12, %v150_v13  ;;  %v169_v32 = vadd.f32 %v141_v10, %v141_v10  ;;  %v182_v33 = vsel %vm178_vm2, %v177_v17, %v175_v16  ;;  %s472_s16 = scalar_lea.vmem %s471_s14, 1024  ;;  %p473_p5 = scmp.lt.s32.totalorder %s691_s29, %s471_s14 }
  0x3e   : > { %v193_v31 = vadd.f32 %v179_v20, %v170_v23  ;;  %v195_v34 = vadd.f32 %v180_v25, %v172_v27  ;;  %v192_v35 = vsel %vm184_vm3, 0.0, %v182_v33  ;;  %v194_v36 = vadd.f32 %v190_v29, %v171_v28  ;;  %p469_p4 = pneg %p468_p12  ;;  %p474_p7 = scmp.lt.s32.totalorder %s472_s16, %s466_s11 }
  0x3f   : > { %v173_v37 = vadd.f32 %v169_v32, %v153_v30  ;;  %v143_v56 = vand.u32 127, %v142_v0  ;;  %vm272_vm7 = vcmask 130048  }
  0x40   : > { %198 = vrot.lane.b32.xlu0 %v193_v31, %s535_s17  ;;  %204 = vrot.lane.b32.xlu1 %v195_v34, %s535_s17  ;;  %p475_p8 = por %p474_p7, %p473_p5 }
  0x41   : > { %v196_v38 = vadd.f32 %v192_v35, %v173_v37  ;;  %vm222_vm5 = vcmp.eq.s32.totalorder %v143_v56, 15  ;;  %vm245_vm6 = vcmp.eq.s32.totalorder %v143_v56, 0 }
  0x42   : > { %p476_p9 = pnand %p475_p8, %p469_p4 }
  0x44   : > { %201 = vrot.lane.b32.xlu0 %v194_v36, %s535_s17  ;;  %207 = vrot.lane.b32.xlu1 %v196_v38, %s535_s17 }
  0xb2   : > { %v199_v39 = vpop.permute.xlu0 %198  ;;  %v205_v41 = vpop.permute.xlu1 %204 }
  0xb3   : > { %v200_v40 = vsel %vm197_vm4, %v199_v39, %v193_v31  ;;  %v206_v42 = vsel %vm197_vm4, %v205_v41, %v195_v34 }
  0xb4   : > { %210 = vrot.lane.b32.xlu0 %v200_v40, %s535_s17 }
  0xb6   : > { %v202_v43 = vpop.permute.xlu0 %201  ;;  %v208_v45 = vpop.permute.xlu1 %207 }
  0xb7   : > { %v203_v44 = vsel %vm197_vm4, %v202_v43, %v194_v36  ;;  %v209_v46 = vsel %vm197_vm4, %v208_v45, %v196_v38 }
  0xb8   : > { %214 = vrot.lane.b32.xlu0 %v206_v42, %s535_s17  ;;  %212 = vrot.lane.b32.xlu1 %v203_v44, %s535_s17 }
  0xbc   : > { %216 = vrot.lane.b32.xlu1 %v209_v46, %s535_s17 }
 0x126   : > { %v211_v47 = vpop.permute.xlu0 %210 }
 0x127   : > { %v218_v48 = vsel %vm197_vm4, %v211_v47, %v193_v31 }
 0x128   : > { %229 = vrot.lane.b32.xlu0 %v218_v48, %s536_s25 }
 0x12a   : > { %v213_v49 = vpop.permute.xlu1 %212  ;;  %v215_v50 = vpop.permute.xlu0 %214 }
 0x12b   : > { %v219_v51 = vsel %vm197_vm4, %v213_v49, %v194_v36  ;;  %v220_v52 = vsel %vm197_vm4, %v215_v50, %v195_v34 }
 0x12c   : > { %231 = vrot.lane.b32.xlu1 %v219_v51, %s536_s25  ;;  %233 = vrot.lane.b32.xlu0 %v220_v52, %s536_s25 }
 0x12e   : > { %v217_v53 = vpop.permute.xlu1 %216 }
 0x12f   : > { %v221_v54 = vsel %vm197_vm4, %v217_v53, %v196_v38 }
 0x130   : > { %235 = vrot.lane.b32.xlu1 %v221_v54, %s536_s25  ;;  %248 = vrot.lane.b32.xlu0 %v218_v48, %s537_s27 }
 0x134   : > { %250 = vrot.lane.b32.xlu1 %v219_v51, %s537_s27  ;;  %252 = vrot.lane.b32.xlu0 %v220_v52, %s537_s27 }
 0x138   : > { %254 = vrot.lane.b32.xlu1 %v221_v54, %s537_s27 }
 0x19a   : > { %v230_v55 = vpop.permute.xlu0 %229 }
 0x19b   : > { %v241_v61 = vsel %vm222_vm5, 0.0, %v230_v55 }
 0x19e   : > { %v232_v57 = vpop.permute.xlu1 %231  ;;  %v234_v58 = vpop.permute.xlu0 %233 }
 0x19f   : > { %v242_v4 = vsel %vm222_vm5, 0.0, %v232_v57  ;;  %v243_v0 = vsel %vm222_vm5, 0.0, %v234_v58 }
 0x1a2   : > { %v236_v59 = vpop.permute.xlu1 %235  ;;  %v249_v60 = vpop.permute.xlu0 %248 }
 0x1a3   : > { %v260_v62 = vsel %vm245_vm6, 0.0, %v249_v60  ;;  %v244_v12 = vsel %vm222_vm5, 0.0, %v236_v59 }
 0x1a4   : > { %v264_v63 = vsub.f32 %v241_v61, %v260_v62 }
 0x1a6   : > { %v268_v1 = vand.u32 2147483647, %v264_v63  ;;  %v251_v2 = vpop.permute.xlu1 %250  ;;  %v253_v3 = vpop.permute.xlu0 %252 }
 0x1a7   : > { %v261_v5 = vsel %vm245_vm6, 0.0, %v251_v2  ;;  %v262_v6 = vsel %vm245_vm6, 0.0, %v253_v3 }
 0x1a8   : > { %273 = vst.msk [vmem:[%s135_s28] sm:$0xff] %vm272_vm7, %v268_v1  ;;  %v265_v7 = vsub.f32 %v242_v4, %v261_v5  ;;  %v266_v8 = vsub.f32 %v243_v0, %v262_v6 }
 0x1aa   : > { %v269_v9 = vand.u32 2147483647, %v265_v7  ;;  %v270_v10 = vand.u32 2147483647, %v266_v8  ;;  %v255_v11 = vpop.permute.xlu1 %254 }
 0x1ab   : > { %v263_v13 = vsel %vm245_vm6, 0.0, %v255_v11 }
 0x1ac   : > { %274 = vst.msk [vmem:[%s135_s28 + $0x8] sm:$0xff] %vm272_vm7, %v269_v9  ;;  %275 = vst.msk [vmem:[%s135_s28 + $0x10] sm:$0xff] %vm272_vm7, %v270_v10  ;;  %v267_v14 = vsub.f32 %v244_v12, %v263_v13 }
 0x1ae   : > { %v271_v15 = vand.u32 2147483647, %v267_v14 }
 0x1b0   : > { %276 = vst.msk [vmem:[%s135_s28 + $0x18] sm:$0xff] %vm272_vm7, %v271_v15 }
 0x1b1   : > { %479 = shalt.err (!%p476_p9)
}
 0x1b2   : > { %s480_s20 = scalar_lea.hbm %s698_s5, 512  ;;  %s484_s24 = scalar_lea.hbm %s742_s1, 2048 }
 0x1b3   : > { %p481_p13 = scmp.ne.s32.totalorder %s698_s5, %s480_s20  ;;  %p485_p2 = scmp.lt.s32.totalorder %s698_s5, %s742_s1 }
 0x1b4   : > { %p486_p3 = scmp.lt.s32.totalorder %s484_s24, %s480_s20 }
 0x1b5   : > { %p482_p1 = pnand %p481_p13, %p751_p11 }
 0x1b6   : > { %p487_p6 = por %p486_p3, %p485_p2 }
 0x1b7   : > { %p483_p0 = pneg %p482_p1 }
 0x1b9   : > { %p488_p10 = pnand %p487_p6, %p483_p0 }
 0x1bb   : > { %491 = shalt.err (!%p488_p10)
}
 0x1bc   : > { %s539_s17 = smov 128   ;;  %s540_s25 = smov 8  }
 0x1bd   : > { %387 = dma.vmem_to_hbm [thread:$0]  (%p751_p11), %s691_s29, 512, %s698_s5, %s278_s10, %s539_s17, %s539_s17, %s540_s25  }
 0x1be PF: > { %p398_p12 = scmp.ge.s32.totalorder %s530_s9, 2  ;;  %s307_s27 = sand.u32 1, %s518_s6  }
 0x1bf   : > { %p752_p4 = scmp.ne.s32.totalorder %s748_s19, 0  ;;  %s308_s28 = scalar_lea.sflag [#allocation4], %s307_s27 }
 0x1c1   : > { %p394_p5 = pnand %p398_p12, %p752_p4 }
 0x1c3   : > { %p395_p7 = pneg %p394_p5 }
 0x1c5   : > { %513 = dma.done.wait (%p395_p7), %s308_s28, 512  }
 0x1c6   : > { %515 = vsyncadd (%p395_p7), %s308_s28, 4294966784  ;;  %p14_p8 = scmp.ge.s32.totalorder %s576_s12, 6   ;;  %s753_s6 = smov %s522_s7 }
 0x1c7   : > { %s754_s7 = smov %s526_s8  ;;  %s755_s8 = smov %s588_s15 }
 0x1c8   : > { %s756_s9 = smov %s576_s12  ;;  %16 = sbr.rel (!%p14_p8) target bundleno = 5 (0x5), region = 69 }
 0x1cd   :  { %313 = vsyncpa [#allocation3], 1 }
 0x1ce   :  { %315 = vsyncpa [#allocation3 + $0x1], 1 }
 0x1cf   :  { %316 = vsyncpa [#allocation4], 1 }
 0x1d0   :  { %318 = vsyncpa [#allocation4 + $0x1], 1 }

</bundles_post_ra>
